<compile_context>
chip_gen: v6e
topology: v6e:2x2x1
jax: 0.10.0
libtpu: 0.0.40
codegen_flags: <defaults>
</compile_context>

<pallas_src>
import math

import jax
import jax.numpy as jnp
from jax.experimental import pallas as pl
from jax.experimental.pallas import tpu as pltpu

LAYER_NORM_EPS = 1e-12
_INV_SQRT2 = 1.0 / math.sqrt(2.0)
_MiB = 1024 * 1024


def _round_up(x, m):
    return ((x + m - 1) // m) * m


def _device_tile_config():
    """Per-generation (tm, tn, vmem_limit_bytes) defaults from the perf review."""
    try:
        kind = jax.devices()[0].device_kind.lower()
    except Exception:  # pragma: no cover - defensive
        kind = ""
    if "v7" in kind:
        # v7x: 64 MiB physical VMEM per TC -> budget ~52 MiB; bf16 streams keep
        # tm=768 / tn=1024 at ~12-20 MiB even for H=1024.
        return 768, 1024, 52 * _MiB
    if "v6" in kind:
        # v6e: 128 MiB physical VMEM; spend the headroom on tm (intensity),
        # not on tn or deeper buffering.
        return 1024, 2048, 100 * _MiB
    if "v5" in kind:
        # v5e: ~240 flop/byte roofline crossover; tm>=512 with bf16 weights.
        return 512, 2048, 96 * _MiB
    # Unknown / older generation: conservative budget.
    return 512, 1024, 48 * _MiB


def _lm_head_kernel(x_ref, w1_ref, b1_ref, g_ref, beta_ref, wd_ref, bd_ref,
                    o_ref, hn_ref):
    # grid = (row tiles, vocab tiles); vocab is the inner ("arbitrary") axis.
    # x_ref:    (tm, H)   row tile of flattened hidden states (weight dtype)
    # w1_ref:   (H, H)    transform dense weight, (in, out) layout
    # b1_ref:   (1, H)    dense bias (f32)
    # g_ref:    (1, H)    LayerNorm gamma (f32)
    # beta_ref: (1, H)    LayerNorm beta (f32)
    # wd_ref:   (H, tn)   decoder (tied embedding) weight tile, (in, out)
    # bd_ref:   (1, tn)   decoder bias tile (f32)
    # o_ref:    (tm, tn)  logits tile (f32 or bf16)
    # hn_ref:   (tm, H)   VMEM scratch holding LN output, persists across vocab tiles
    j = pl.program_id(1)

    @pl.when(j == 0)
    def _():
        # dense (MXU), f32 accumulation; x is already streamed in the weight
        # dtype, so no per-tile cast is needed here.
        # TODO(synk): pass precision=jax.lax.Precision.HIGHEST on the f32-weight
        # parity path if fidelity beyond ~1e-4 is required.
        h = jnp.dot(x_ref[...], w1_ref[...], preferred_element_type=jnp.float32)
        h = h + b1_ref[...]

        # erf-gelu (identical to the torch reference), f32 on VPU/EUP
        h = h * 0.5 * (1.0 + jax.lax.erf(h * _INV_SQRT2))

        # LayerNorm over the last dim, f32
        mu = jnp.mean(h, axis=-1, keepdims=True)
        xc = h - mu
        var = jnp.mean(xc * xc, axis=-1, keepdims=True)
        hn = xc * jax.lax.rsqrt(var + LAYER_NORM_EPS)
        hn = hn * g_ref[...] + beta_ref[...]

        # cast once into scratch (bf16 on the fast path)
        hn_ref[...] = hn.astype(hn_ref.dtype)

    # decoder projection for this vocab tile; hn is reused from scratch
    logits = jnp.dot(hn_ref[...], wd_ref[...], preferred_element_type=jnp.float32)
    o_ref[...] = (logits + bd_ref[...]).astype(o_ref.dtype)


def prepare_params(params, *, weight_dtype=jnp.bfloat16, tn_max=2048):
    """One-time conversion of torch-layout params into kernel layout.

    Done once outside the hot path:
      * (V, H) -> (H, V) transpose of the tied embedding + dtype cast,
      * vocab-axis padding of the decoder weight / bias to a fixed multiple of
        the maximum vocab tile, so the forward never pads the largest tensor.
    """
    H = params["dense_w"].shape[0]
    V = params["embedding_w"].shape[0]
    pad_mult = min(int(tn_max), _round_up(V, 128))
    Vp = _round_up(V, pad_mult)

    wd = jnp.asarray(params["embedding_w"], jnp.float32).T.astype(weight_dtype)  # (H, V)
    bd = jnp.asarray(params["decoder_bias"], jnp.float32).reshape(1, V)
    if Vp != V:
        wd = jnp.pad(wd, ((0, 0), (0, Vp - V)))
        bd = jnp.pad(bd, ((0, 0), (0, Vp - V)))

    return {
        # weights in (in, out) layout, optionally bf16 (f32 accumulation in-kernel)
        "w1": jnp.asarray(params["dense_w"], jnp.float32).T.astype(weight_dtype),  # (H, H)
        "wd": wd,                                                                   # (H, Vp)
        # small vectors stay f32 for numerics
        "b1": jnp.asarray(params["dense_b"], jnp.float32).reshape(1, H),
        "gamma": jnp.asarray(params["ln_gamma"], jnp.float32).reshape(1, H),
        "beta": jnp.asarray(params["ln_beta"], jnp.float32).reshape(1, H),
        "bd": bd,                                                                   # (1, Vp)
        "vocab_size": V,
    }


def bert_lm_prediction_head(x, prepared, *, tm=None, tn=None, logits_dtype=None,
                            vmem_limit_bytes=None):
    """x: (B, S, H). Returns logits (B, S, V).

    tm/tn/vmem default to per-generation values (see _device_tile_config).
    logits_dtype defaults to bf16 on the bf16-weight fast path (halves the
    dominant HBM writeback) and f32 on the f32-weight parity path.
    """
    B, S, H = x.shape
    w1, b1, g, beta = prepared["w1"], prepared["b1"], prepared["gamma"], prepared["beta"]
    wd, bd = prepared["wd"], prepared["bd"]
    V = prepared["vocab_size"]
    Vp = wd.shape[1]
    wdtype = wd.dtype

    cfg_tm, cfg_tn, cfg_vmem = _device_tile_config()
    tm = cfg_tm if tm is None else tm
    tn = cfg_tn if tn is None else tn
    vmem_limit = cfg_vmem if vmem_limit_bytes is None else vmem_limit_bytes
    if logits_dtype is None:
        logits_dtype = jnp.bfloat16 if wdtype == jnp.bfloat16 else jnp.float32

    N = B * S
    # clamp tiles to the (padded) problem size so tiny shapes don't over-pad
    tm = max(8, (min(tm, _round_up(N, 8)) // 8) * 8)
    tn = max(128, (min(tn, Vp) // 128) * 128)
    while Vp % tn:          # Vp is a multiple of 128, so this terminates
        tn -= 128

    Np = _round_up(N, tm)

    # x streamed in the weight dtype (bf16 on the fast path): half the DMA
    # bytes / double-buffer VMEM, and no per-tile in-kernel cast.
    x2 = x.reshape(N, H).astype(wdtype)
    if Np != N:
        x2 = jnp.pad(x2, ((0, Np - N), (0, 0)))

    grid = (Np // tm, Vp // tn)

    xb = jnp.dtype(wdtype).itemsize
    ob = jnp.dtype(logits_dtype).itemsize
    cost = pl.CostEstimate(
        flops=2 * Np * H * (H + Vp),
        transcendentals=Np * H,                                  # erf in gelu
        bytes_accessed=(Np // tm) * H * Vp * xb                  # decoder-weight restream
                       + Np * Vp * ob                            # logits writeback
                       + Np * H * xb                             # x stream
                       + H * H * xb,                             # dense weight
    )

    out = pl.pallas_call(
        _lm_head_kernel,
        out_shape=jax.ShapeDtypeStruct((Np, Vp), logits_dtype),
        grid_spec=pltpu.PrefetchScalarGridSpec(
            num_scalar_prefetch=0,
            grid=grid,
            in_specs=[
                pl.BlockSpec((tm, H), lambda i, j: (i, 0)),    # x row tile (fetched once per i)
                # Grid-invariant operands below (constant index maps). Their
                # double buffers (<~4.5 MiB at H=1024) are included in the
                # per-generation VMEM budgets.
                # TODO(synk): single-buffer w1 via pipeline_mode=pl.Buffered(1)
                # once verified against the Mosaic memory report.
                pl.BlockSpec((H, H), lambda i, j: (0, 0)),     # dense weight (resident)
                pl.BlockSpec((1, H), lambda i, j: (0, 0)),     # dense bias
                pl.BlockSpec((1, H), lambda i, j: (0, 0)),     # ln gamma
                pl.BlockSpec((1, H), lambda i, j: (0, 0)),     # ln beta
                pl.BlockSpec((H, tn), lambda i, j: (0, j)),    # decoder weight column tile
                pl.BlockSpec((1, tn), lambda i, j: (0, j)),    # decoder bias tile
            ],
            out_specs=pl.BlockSpec((tm, tn), lambda i, j: (i, j)),
            scratch_shapes=[pltpu.VMEM((tm, H), wdtype)],      # LN result, reused across j
        ),
        compiler_params=pltpu.CompilerParams(
            # TODO(synk): on v7x verify axis 0 really shards across both
            # TensorCores; if not, switch to pltpu.CORE_PARALLEL on axis 0.
            dimension_semantics=("parallel", "arbitrary"),
            vmem_limit_bytes=vmem_limit,
        ),
        cost_estimate=cost,
    )(x2, w1, b1, g, beta, wd, bd)

    if Np != N or Vp != V:
        out = out[:N, :V]
    return out.reshape(B, S, V)


def _reference(x, params):
    h = x @ params["dense_w"].T + params["dense_b"]
    h = h * 0.5 * (1.0 + jax.lax.erf(h / math.sqrt(2.0)))
    mu = h.mean(-1, keepdims=True)
    var = ((h - mu) ** 2).mean(-1, keepdims=True)
    h = (h - mu) / jnp.sqrt(var + LAYER_NORM_EPS)
    h = h * params["ln_gamma"] + params["ln_beta"]
    return h @ params["embedding_w"].T + params["decoder_bias"]


if __name__ == "__main__":
    B, S, H, V = 2, 8, 128, 256
    key = jax.random.PRNGKey(0)
    kx, kw1, kb1, kg, kbeta, kemb = jax.random.split(key, 6)

    x = jax.random.normal(kx, (B, S, H), dtype=jnp.float32)
    params = {
        "dense_w": 0.02 * jax.random.normal(kw1, (H, H), dtype=jnp.float32),
        "dense_b": 0.01 * jax.random.normal(kb1, (H,), dtype=jnp.float32),
        "ln_gamma": 1.0 + 0.01 * jax.random.normal(kg, (H,), dtype=jnp.float32),
        "ln_beta": 0.01 * jax.random.normal(kbeta, (H,), dtype=jnp.float32),
        # tied bert embedding weights (vocab, hidden)
        "embedding_w": 0.02 * jax.random.normal(kemb, (V, H), dtype=jnp.float32),
        # module inits decoder bias to zeros; keep zeros for fidelity
        "decoder_bias": jnp.zeros((V,), dtype=jnp.float32),
    }

    ref = _reference(x, params)

    # 1) exact-fidelity path: f32 weights, f32 logits
    prep_f32 = prepare_params(params, weight_dtype=jnp.float32)
    out_f32 = jax.block_until_ready(bert_lm_prediction_head(x, prep_f32))
    assert out_f32.shape == (B, S, V)
    assert out_f32.dtype == jnp.float32
    assert jnp.allclose(out_f32, ref, atol=1e-4, rtol=1e-4), "f32 path mismatch vs reference"

    # 2) recommended fast path: bf16 weights + bf16 x stream + bf16 logits,
    #    f32 accumulation / f32 gelu+LayerNorm in-kernel.
    prep_bf16 = prepare_params(params, weight_dtype=jnp.bfloat16)
    out_bf16 = jax.block_until_ready(bert_lm_prediction_head(x, prep_bf16))
    assert out_bf16.shape == (B, S, V)
    assert out_bf16.dtype == jnp.bfloat16
    assert jnp.allclose(out_bf16.astype(jnp.float32), ref, atol=5e-2, rtol=5e-2), \
        "bf16 path mismatch vs reference"

    # 3) bf16 weights but f32 logits (for consumers that need f32 output)
    out_mixed = jax.block_until_ready(
        bert_lm_prediction_head(x, prep_bf16, logits_dtype=jnp.float32))
    assert out_mixed.dtype == jnp.float32
    assert jnp.allclose(out_mixed, ref, atol=5e-2, rtol=5e-2), "mixed path mismatch vs reference"

    print("KERNEL_OK")
</pallas_src>

<mosaic_0001>
module attributes {stable_mosaic.version = 11 : i64} {
  func.func @_lm_head_kernel(%arg0: i32, %arg1: i32, %arg2: memref<16x128xf32, #tpu.memory_space<vmem>>, %arg3: memref<128x128xf32, #tpu.memory_space<vmem>>, %arg4: memref<1x128xf32, #tpu.memory_space<vmem>>, %arg5: memref<1x128xf32, #tpu.memory_space<vmem>>, %arg6: memref<1x128xf32, #tpu.memory_space<vmem>>, %arg7: memref<128x256xf32, #tpu.memory_space<vmem>>, %arg8: memref<1x256xf32, #tpu.memory_space<vmem>>, %arg9: memref<16x256xf32, #tpu.memory_space<vmem>>, %arg10: memref<16x128xf32, #tpu.memory_space<vmem>>) attributes {dimension_semantics = [#tpu.dimension_semantics<parallel>, #tpu.dimension_semantics<arbitrary>], iteration_bounds = array<i64: 1, 1>, scalar_prefetch = 0 : i64, scratch_operands = 1 : i64, tpu.core_type = #tpu.core_type<tc>, window_params = [{transform_indices = @transform_0, window_bounds = array<i64: 16, 128>}, {pipeline_mode = #tpu.pipeline_mode<synchronous>, transform_indices = @transform_1, window_bounds = array<i64: 128, 128>}, {pipeline_mode = #tpu.pipeline_mode<synchronous>, transform_indices = @transform_2, window_bounds = array<i64: 1, 128>}, {pipeline_mode = #tpu.pipeline_mode<synchronous>, transform_indices = @transform_3, window_bounds = array<i64: 1, 128>}, {pipeline_mode = #tpu.pipeline_mode<synchronous>, transform_indices = @transform_4, window_bounds = array<i64: 1, 128>}, {transform_indices = @transform_5, window_bounds = array<i64: 128, 256>}, {transform_indices = @transform_6, window_bounds = array<i64: 1, 256>}, {transform_indices = @transform_7, window_bounds = array<i64: 16, 256>}]} {
    %c0_i32 = arith.constant 0 : i32
    %0 = arith.cmpi eq, %arg1, %c0_i32 : i32
    %1 = arith.extui %0 : i1 to i32
    %c0_i32_0 = arith.constant 0 : i32
    %2 = arith.cmpi ne, %1, %c0_i32_0 : i32
    scf.if %2 {
      %c0_8 = arith.constant 0 : index
      %c0_9 = arith.constant 0 : index
      %10 = vector.load %arg2[%c0_8, %c0_9] : memref<16x128xf32, #tpu.memory_space<vmem>>, vector<16x128xf32>
      %c0_10 = arith.constant 0 : index
      %c0_11 = arith.constant 0 : index
      %11 = vector.load %arg3[%c0_10, %c0_11] : memref<128x128xf32, #tpu.memory_space<vmem>>, vector<128x128xf32>
      %cst_12 = arith.constant dense<0.000000e+00> : vector<16x128xf32>
      %12 = tpu.matmul %10, %11, %cst_12 {dimension_numbers = #tpu.dot_dimension_numbers<[1], [0], [0], [1], [0, 0, 1, 1], [], []>} : vector<16x128xf32>, vector<128x128xf32>, vector<16x128xf32> -> vector<16x128xf32>
      %c0_13 = arith.constant 0 : index
      %c0_14 = arith.constant 0 : index
      %13 = vector.load %arg4[%c0_13, %c0_14] : memref<1x128xf32, #tpu.memory_space<vmem>>, vector<1x128xf32>
      %14 = vector.broadcast %13 : vector<1x128xf32> to vector<16x128xf32>
      %15 = arith.addf %12, %14 : vector<16x128xf32>
      %cst_15 = arith.constant 5.000000e-01 : f32
      %16 = vector.broadcast %cst_15 : f32 to vector<16x128xf32>
      %17 = arith.mulf %15, %16 : vector<16x128xf32>
      %cst_16 = arith.constant 0.707106769 : f32
      %18 = vector.broadcast %cst_16 : f32 to vector<16x128xf32>
      %19 = arith.mulf %15, %18 : vector<16x128xf32>
      %20 = math.erf %19 : vector<16x128xf32>
      %cst_17 = arith.constant 1.000000e+00 : f32
      %21 = vector.broadcast %cst_17 : f32 to vector<16x128xf32>
      %22 = arith.addf %21, %20 : vector<16x128xf32>
      %23 = arith.mulf %17, %22 : vector<16x128xf32>
      %cst_18 = arith.constant dense<0.000000e+00> : vector<16xf32>
      %24 = vector.multi_reduction <add>, %23, %cst_18 [1] : vector<16x128xf32> to vector<16xf32>
      %25 = vector.shape_cast %24 : vector<16xf32> to vector<16x1xf32>
      %cst_19 = arith.constant 1.280000e+02 : f32
      %26 = vector.broadcast %cst_19 : f32 to vector<16x1xf32>
      %27 = arith.divf %25, %26 : vector<16x1xf32>
      %28 = vector.broadcast %27 : vector<16x1xf32> to vector<16x128xf32>
      %29 = arith.subf %23, %28 : vector<16x128xf32>
      %30 = arith.mulf %29, %29 : vector<16x128xf32>
      %cst_20 = arith.constant dense<0.000000e+00> : vector<16xf32>
      %31 = vector.multi_reduction <add>, %30, %cst_20 [1] : vector<16x128xf32> to vector<16xf32>
      %32 = vector.shape_cast %31 : vector<16xf32> to vector<16x1xf32>
      %cst_21 = arith.constant 1.280000e+02 : f32
      %33 = vector.broadcast %cst_21 : f32 to vector<16x1xf32>
      %34 = arith.divf %32, %33 : vector<16x1xf32>
      %cst_22 = arith.constant 9.99999996E-13 : f32
      %35 = vector.broadcast %cst_22 : f32 to vector<16x1xf32>
      %36 = arith.addf %34, %35 : vector<16x1xf32>
      %37 = math.rsqrt %36 : vector<16x1xf32>
      %38 = vector.broadcast %37 : vector<16x1xf32> to vector<16x128xf32>
      %39 = arith.mulf %29, %38 : vector<16x128xf32>
      %c0_23 = arith.constant 0 : index
      %c0_24 = arith.constant 0 : index
      %40 = vector.load %arg5[%c0_23, %c0_24] : memref<1x128xf32, #tpu.memory_space<vmem>>, vector<1x128xf32>
      %41 = vector.broadcast %40 : vector<1x128xf32> to vector<16x128xf32>
      %42 = arith.mulf %39, %41 : vector<16x128xf32>
      %c0_25 = arith.constant 0 : index
      %c0_26 = arith.constant 0 : index
      %43 = vector.load %arg6[%c0_25, %c0_26] : memref<1x128xf32, #tpu.memory_space<vmem>>, vector<1x128xf32>
      %44 = vector.broadcast %43 : vector<1x128xf32> to vector<16x128xf32>
      %45 = arith.addf %42, %44 : vector<16x128xf32>
      %c0_27 = arith.constant 0 : index
      %c0_28 = arith.constant 0 : index
      %46 = vector.load %arg10[%c0_27, %c0_28] : memref<16x128xf32, #tpu.memory_space<vmem>>, vector<16x128xf32>
      tpu.vector_store %arg10[%c0_27, %c0_28], %45 {strides = array<i32>} : memref<16x128xf32, #tpu.memory_space<vmem>>, vector<16x128xf32>,
    } else {
    }
    %c0 = arith.constant 0 : index
    %c0_1 = arith.constant 0 : index
    %3 = vector.load %arg10[%c0, %c0_1] : memref<16x128xf32, #tpu.memory_space<vmem>>, vector<16x128xf32>
    %c0_2 = arith.constant 0 : index
    %c0_3 = arith.constant 0 : index
    %4 = vector.load %arg7[%c0_2, %c0_3] : memref<128x256xf32, #tpu.memory_space<vmem>>, vector<128x256xf32>
    %cst = arith.constant dense<0.000000e+00> : vector<16x256xf32>
    %5 = tpu.matmul %3, %4, %cst {dimension_numbers = #tpu.dot_dimension_numbers<[1], [0], [0], [1], [0, 0, 1, 1], [], []>} : vector<16x128xf32>, vector<128x256xf32>, vector<16x256xf32> -> vector<16x256xf32>
    %c0_4 = arith.constant 0 : index
    %c0_5 = arith.constant 0 : index
    %6 = vector.load %arg8[%c0_4, %c0_5] : memref<1x256xf32, #tpu.memory_space<vmem>>, vector<1x256xf32>
    %7 = vector.broadcast %6 : vector<1x256xf32> to vector<16x256xf32>
    %8 = arith.addf %5, %7 : vector<16x256xf32>
    %c0_6 = arith.constant 0 : index
    %c0_7 = arith.constant 0 : index
    %9 = vector.load %arg9[%c0_6, %c0_7] : memref<16x256xf32, #tpu.memory_space<vmem>>, vector<16x256xf32>
    tpu.vector_store %arg9[%c0_6, %c0_7], %8 {strides = array<i32>} : memref<16x256xf32, #tpu.memory_space<vmem>>, vector<16x256xf32>,
    return
  }
  func.func @transform_0(%arg0: i32, %arg1: i32) -> (i32, i32) {
    %c0_i32 = arith.constant 0 : i32
    %c0_i32_0 = arith.constant 0 : i32
    return %arg0, %c0_i32 : i32, i32
  }
  func.func @transform_1(%arg0: i32, %arg1: i32) -> (i32, i32) {
    %c0_i32 = arith.constant 0 : i32
    %c0_i32_0 = arith.constant 0 : i32
    %c0_i32_1 = arith.constant 0 : i32
    return %c0_i32, %c0_i32_0 : i32, i32
  }
  func.func @transform_2(%arg0: i32, %arg1: i32) -> (i32, i32) {
    %c0_i32 = arith.constant 0 : i32
    %c0_i32_0 = arith.constant 0 : i32
    %c0_i32_1 = arith.constant 0 : i32
    return %c0_i32, %c0_i32_0 : i32, i32
  }
  func.func @transform_3(%arg0: i32, %arg1: i32) -> (i32, i32) {
    %c0_i32 = arith.constant 0 : i32
    %c0_i32_0 = arith.constant 0 : i32
    %c0_i32_1 = arith.constant 0 : i32
    return %c0_i32, %c0_i32_0 : i32, i32
  }
  func.func @transform_4(%arg0: i32, %arg1: i32) -> (i32, i32) {
    %c0_i32 = arith.constant 0 : i32
    %c0_i32_0 = arith.constant 0 : i32
    %c0_i32_1 = arith.constant 0 : i32
    return %c0_i32, %c0_i32_0 : i32, i32
  }
  func.func @transform_5(%arg0: i32, %arg1: i32) -> (i32, i32) {
    %c0_i32 = arith.constant 0 : i32
    %c0_i32_0 = arith.constant 0 : i32
    return %c0_i32, %arg1 : i32, i32
  }
  func.func @transform_6(%arg0: i32, %arg1: i32) -> (i32, i32) {
    %c0_i32 = arith.constant 0 : i32
    %c0_i32_0 = arith.constant 0 : i32
    return %c0_i32, %arg1 : i32, i32
  }
  func.func @transform_7(%arg0: i32, %arg1: i32) -> (i32, i32) {
    %c0_i32 = arith.constant 0 : i32
    return %arg0, %arg1 : i32, i32
  }
}

</mosaic_0001>

<bundles_post_ra>
// kernel: tpu_custom_call.1
= control target key start
LH: loop header
LB: loop body
LE: loop exit
PB: predicated region body
PF: predicated region fallthrough
CT: control target
= control target key end

     0   :  { %12 = vsyncpa [#allocation4], 0  ;;  %s618_s0 = inlined_call_operand.hbm [shape: f32[16,128], index: 0, kind: input, shape index: {}]   ;;  %s619_s1 = inlined_call_operand.hbm [shape: f32[128,128], index: 1, kind: input, shape index: {}]   ;;  %s620_s2 = inlined_call_operand.vmem [shape: f32[1,128], index: 2, kind: input, shape index: {}]   ;;  %s621_s3 = inlined_call_operand.vmem [shape: f32[1,128], index: 3, kind: input, shape index: {}]   ;;  %s622_s4 = inlined_call_operand.vmem [shape: f32[1,128], index: 4, kind: input, shape index: {}]   ;;  %s623_s5 = inlined_call_operand.hbm [shape: f32[128,256], index: 5, kind: input, shape index: {}]   ;;  %s624_s6 = inlined_call_operand.vmem [shape: f32[1,256], index: 6, kind: input, shape index: {}]   ;;  %s625_s7 = inlined_call_operand.hbm [shape: f32[16,256], index: 7, kind: output, shape index: {}]  }
   0x1   :  { %13 = vsyncpa [#allocation7], 0 }
   0x2   :  { %14 = vsyncpa [#allocation5], 0  ;;  %s529_s24 = smov [#allocation6]   ;;  %s530_s26 = smov [#allocation3]  }
   0x3   :  { %s32_s25 = sshll.u32 %s529_s24, 4  ;;  %s20_s27 = sshll.u32 %s530_s26, 4  ;;  %s33_s25 = int_to_ptr.vmem [resolvable:$true] %s32_s25  ;;  %s21_s27 = int_to_ptr.vmem [resolvable:$true] %s20_s27 }
   0x4   :  { %s451_s28 = scalar_lea.vmem %s33_s25, 2048  ;;  %p456_p1 = scmp.lt.s32.totalorder %s33_s25, %s33_s25 }
   0x5   :  { %p452_p0 = scmp.ne.s32.totalorder %s33_s25, %s451_s28  ;;  %p457_p2 = scmp.lt.s32.totalorder %s451_s28, %s451_s28 }
   0x7   :  { %p458_p3 = por %p457_p2, %p456_p1 }
   0x9   :  { %p459_p4 = pnand %p458_p3, %p452_p0 }
   0xb   :  { %462 = shalt.err (!%p459_p4)
}
   0xc   :  { %s531_s29 = smov 128   ;;  %s532_s30 = smov 8  }
   0xd   :  { %38 = dma.hbm_to_vmem [thread:$0]  %s619_s1, 2048, %s33_s25, [#allocation7], %s531_s29, %s531_s29, %s532_s30  }
   0xe   :  { %s471_s10 = scalar_lea.vmem %s21_s27, 256  ;;  %p476_p6 = scmp.lt.s32.totalorder %s21_s27, %s21_s27 }
   0xf   :  { %p472_p5 = scmp.ne.s32.totalorder %s21_s27, %s471_s10  ;;  %p477_p7 = scmp.lt.s32.totalorder %s471_s10, %s471_s10 }
  0x11   :  { %p478_p8 = por %p477_p7, %p476_p6 }
  0x13   :  { %p479_p9 = pnand %p478_p8, %p472_p5 }
  0x15   :  { %482 = shalt.err (!%p479_p9)
}
  0x16   :  { %26 = dma.hbm_to_vmem [thread:$0]  %s618_s0, 256, %s21_s27, [#allocation4], %s531_s29, %s531_s29, %s532_s30  }
  0x17   :  { %s533_s13 = smov [#allocation8]  }
  0x18   :  { %s50_s14 = sshll.u32 %s533_s13, 4  ;;  %s51_s14 = int_to_ptr.vmem [resolvable:$true] %s50_s14 }
  0x19   :  { %s491_s15 = scalar_lea.vmem %s51_s14, 4096  ;;  %p496_p11 = scmp.lt.s32.totalorder %s51_s14, %s51_s14 }
  0x1a   :  { %p492_p10 = scmp.ne.s32.totalorder %s51_s14, %s491_s15  ;;  %p497_p12 = scmp.lt.s32.totalorder %s491_s15, %s491_s15 }
  0x1c   :  { %p498_p13 = por %p497_p12, %p496_p11 }
  0x1e   :  { %p499_p0 = pnand %p498_p13, %p492_p10 }
  0x20   :  { %502 = shalt.err (!%p499_p0)
}
  0x21   :  { %s534_s1 = smov 256   ;;  %s535_s16 = smov 16  }
  0x22   :  { %56 = dma.hbm_to_vmem [thread:$0]  %s623_s5, 4096, %s51_s14, [#allocation7], %s534_s1, %s534_s1, %s535_s16  }
  0x23   :  { %523 = dma.done.wait [#allocation4], 256  }
  0x24   :  { %524 = vsyncadd [#allocation4], 4294967040 }
  0x25   :  { %525 = dma.done.wait [#allocation7], 6144  }
  0x26   :  { %526 = vsyncadd [#allocation7], 4294961152  ;;  %v89_v0 = vld [vmem:[#allocation6 + $0x78] sm:$0xff]  ;;  %v88_v1 = vld [vmem:[#allocation6 + $0x70] sm:$0xff]  ;;  %v536_v62 = vmov 0.0  }
  0x27   :  { %391 = vmatprep.subr.mxu0 %v89_v0  ;;  %v87_v2 = vld [vmem:[#allocation6 + $0x68] sm:$0xff]  ;;  %v86_v3 = vld [vmem:[#allocation6 + $0x60] sm:$0xff]  ;;  %v72_v4 = vld [vmem:[#allocation3] sm:$0xff]  ;;  %335 = vmatprep.mubr.f32.mxu1 %v536_v62 }
  0x28   :  { %392 = vmatpush3.msra.mxu0 %v89_v0  ;;  %v85_v5 = vld [vmem:[#allocation6 + $0x58] sm:$0xff]  ;;  %423 = vmatprep.mubr.f32.mxu0 %v72_v4  ;;  %v84_v6 = vld [vmem:[#allocation6 + $0x50] sm:$0xff]  ;;  %v83_v7 = vld [vmem:[#allocation6 + $0x48] sm:$0xff] }
  0x29   :  { %393 = vmatprep.subr.mxu0 %v88_v1  ;;  %v82_v8 = vld [vmem:[#allocation6 + $0x40] sm:$0xff]  ;;  %v81_v9 = vld [vmem:[#allocation6 + $0x38] sm:$0xff]  ;;  %v80_v10 = vld [vmem:[#allocation6 + $0x30] sm:$0xff] }
  0x2a   :  { %394 = vmatpush3.msra.mxu0 %v88_v1  ;;  %v79_v11 = vld [vmem:[#allocation6 + $0x28] sm:$0xff]  ;;  %v78_v12 = vld [vmem:[#allocation6 + $0x20] sm:$0xff]  ;;  %v77_v13 = vld [vmem:[#allocation6 + $0x18] sm:$0xff] }
  0x2b   :  { %395 = vmatprep.subr.mxu0 %v87_v2  ;;  %v76_v14 = vld [vmem:[#allocation6 + $0x10] sm:$0xff]  ;;  %v75_v15 = vld [vmem:[#allocation6 + $0x8] sm:$0xff]  ;;  %v74_v16 = vld [vmem:[#allocation6] sm:$0xff] }
  0x2c   :  { %396 = vmatpush3.msra.mxu0 %v87_v2  ;;  %v73_v17 = vld [vmem:[#allocation3 + $0x8] sm:$0xff]  ;;  %v370_v18 = vld [vmem:[%s620_s2] ss:$0 sm:$0xff]  ;;  %v256_v35 = vld [vmem:[#allocation8 + $0xe8] sm:$0xff] }
  0x2d   :  { %397 = vmatprep.subr.mxu0 %v86_v3  ;;  %v258_v33 = vld [vmem:[#allocation8 + $0xf8] sm:$0xff]  ;;  %v257_v34 = vld [vmem:[#allocation8 + $0xf0] sm:$0xff]  ;;  %v255_v36 = vld [vmem:[#allocation8 + $0xe0] sm:$0xff] }
  0x2e   :  { %398 = vmatpush3.msra.mxu0 %v86_v3  ;;  %271 = vmatprep.subr.mxu1 %v258_v33  ;;  %v254_v37 = vld [vmem:[#allocation8 + $0xd8] sm:$0xff]  ;;  %v253_v38 = vld [vmem:[#allocation8 + $0xd0] sm:$0xff]  ;;  %v252_v39 = vld [vmem:[#allocation8 + $0xc8] sm:$0xff] }
  0x2f   :  { %399 = vmatprep.subr.mxu0 %v85_v5  ;;  %272 = vmatpush1.msra.mxu1 %v257_v34  ;;  %v251_v40 = vld [vmem:[#allocation8 + $0xc0] sm:$0xff]  ;;  %v250_v49 = vld [vmem:[#allocation8 + $0xb8] sm:$0xff]  ;;  %v249_v50 = vld [vmem:[#allocation8 + $0xb0] sm:$0xff] }
  0x30   :  { %400 = vmatpush3.msra.mxu0 %v85_v5  ;;  %273 = vmatprep.subr.mxu1 %v256_v35  ;;  %v248_v51 = vld [vmem:[#allocation8 + $0xa8] sm:$0xff]  ;;  %v247_v52 = vld [vmem:[#allocation8 + $0xa0] sm:$0xff]  ;;  %v246_v53 = vld [vmem:[#allocation8 + $0x98] sm:$0xff] }
  0x31   :  { %401 = vmatprep.subr.mxu0 %v84_v6  ;;  %274 = vmatpush1.msra.mxu1 %v255_v36  ;;  %v245_v54 = vld [vmem:[#allocation8 + $0x90] sm:$0xff]  ;;  %v244_v55 = vld [vmem:[#allocation8 + $0x88] sm:$0xff]  ;;  %v243_v56 = vld [vmem:[#allocation8 + $0x80] sm:$0xff] }
  0x32   :  { %402 = vmatpush3.msra.mxu0 %v84_v6  ;;  %275 = vmatprep.subr.mxu1 %v254_v37  ;;  %v242_v57 = vld [vmem:[#allocation8 + $0x78] sm:$0xff]  ;;  %v241_v58 = vld [vmem:[#allocation8 + $0x70] sm:$0xff]  ;;  %v240_v59 = vld [vmem:[#allocation8 + $0x68] sm:$0xff] }
  0x33   :  { %403 = vmatprep.subr.mxu0 %v83_v7  ;;  %276 = vmatpush1.msra.mxu1 %v253_v38  ;;  %v239_v60 = vld [vmem:[#allocation8 + $0x60] sm:$0xff]  ;;  %v238_v61 = vld [vmem:[#allocation8 + $0x58] sm:$0xff]  ;;  %v237_v63 = vld [vmem:[#allocation8 + $0x50] sm:$0xff] }
  0x34   :  { %404 = vmatpush3.msra.mxu0 %v83_v7  ;;  %277 = vmatprep.subr.mxu1 %v252_v39  ;;  %v236_v0 = vld [vmem:[#allocation8 + $0x48] sm:$0xff]  ;;  %v235_v1 = vld [vmem:[#allocation8 + $0x40] sm:$0xff]  ;;  %v234_v2 = vld [vmem:[#allocation8 + $0x38] sm:$0xff] }
  0x35   :  { %405 = vmatprep.subr.mxu0 %v82_v8  ;;  %278 = vmatpush1.msra.mxu1 %v251_v40  ;;  %v233_v3 = vld [vmem:[#allocation8 + $0x30] sm:$0xff]  ;;  %v232_v4 = vld [vmem:[#allocation8 + $0x28] sm:$0xff]  ;;  %v231_v5 = vld [vmem:[#allocation8 + $0x20] sm:$0xff] }
  0x36   :  { %406 = vmatpush3.msra.mxu0 %v82_v8  ;;  %279 = vmatprep.subr.mxu1 %v250_v49  ;;  %v230_v6 = vld [vmem:[#allocation8 + $0x18] sm:$0xff]  ;;  %v229_v7 = vld [vmem:[#allocation8 + $0x10] sm:$0xff]  ;;  %v228_v8 = vld [vmem:[#allocation8 + $0x8] sm:$0xff] }
  0x37   :  { %407 = vmatprep.subr.mxu0 %v81_v9  ;;  %280 = vmatpush1.msra.mxu1 %v249_v50 }
  0x38   :  { %408 = vmatpush3.msra.mxu0 %v81_v9  ;;  %281 = vmatprep.subr.mxu1 %v248_v51  ;;  %v227_v9 = vld [vmem:[#allocation8] sm:$0xff] }
  0x39   :  { %409 = vmatprep.subr.mxu0 %v80_v10  ;;  %282 = vmatpush1.msra.mxu1 %v247_v52 }
  0x3a   :  { %410 = vmatpush3.msra.mxu0 %v80_v10  ;;  %283 = vmatprep.subr.mxu1 %v246_v53 }
  0x3b   :  { %411 = vmatprep.subr.mxu0 %v79_v11  ;;  %284 = vmatpush1.msra.mxu1 %v245_v54 }
  0x3c   :  { %412 = vmatpush3.msra.mxu0 %v79_v11  ;;  %285 = vmatprep.subr.mxu1 %v244_v55 }
  0x3d   :  { %413 = vmatprep.subr.mxu0 %v78_v12  ;;  %286 = vmatpush1.msra.mxu1 %v243_v56 }
  0x3e   :  { %414 = vmatpush3.msra.mxu0 %v78_v12  ;;  %287 = vmatprep.subr.mxu1 %v242_v57 }
  0x3f   :  { %415 = vmatprep.subr.mxu0 %v77_v13  ;;  %288 = vmatpush1.msra.mxu1 %v241_v58 }
  0x40   :  { %416 = vmatpush3.msra.mxu0 %v77_v13  ;;  %289 = vmatprep.subr.mxu1 %v240_v59 }
  0x41   :  { %417 = vmatprep.subr.mxu0 %v76_v14  ;;  %290 = vmatpush1.msra.mxu1 %v239_v60 }
  0x42   :  { %418 = vmatpush3.msra.mxu0 %v76_v14  ;;  %291 = vmatprep.subr.mxu1 %v238_v61 }
  0x43   :  { %419 = vmatprep.subr.mxu0 %v75_v15  ;;  %292 = vmatpush1.msra.mxu1 %v237_v63 }
  0x44   :  { %420 = vmatpush3.msra.mxu0 %v75_v15  ;;  %293 = vmatprep.subr.mxu1 %v236_v0 }
  0x45   :  { %421 = vmatprep.subr.mxu0 %v74_v16  ;;  %294 = vmatpush1.msra.mxu1 %v235_v1 }
  0x46   :  { %422 = vmatpush3.msra.mxu0 %v74_v16  ;;  %295 = vmatprep.subr.mxu1 %v234_v2 }
  0x47   :  { %424 = vmatmul.mubr.f32.vlgmr.msra.gmra.mxu0 %v73_v17  ;;  %296 = vmatpush1.msra.mxu1 %v233_v3  ;;  %v371_v17 = vld [vmem:[%s621_s3] ss:$0 sm:$0xff] }
  0x48   :  { %297 = vmatprep.subr.mxu1 %v232_v4 }
  0x49   :  { %298 = vmatpush1.msra.mxu1 %v231_v5 }
  0x4a   :  { %299 = vmatprep.subr.mxu1 %v230_v6 }
  0x4b   :  { %300 = vmatpush1.msra.mxu1 %v229_v7 }
  0x4c   :  { %301 = vmatprep.subr.mxu1 %v228_v8 }
  0x4d   :  { %302 = vmatpush1.msra.mxu1 %v227_v9 }
 0x107   :  { %v425_v19 = vpop.f32.mrf.mxu0 }
 0x108   :  { %v169_v20 = vadd.f32 %v425_v19, %v370_v18  ;;  %v372_v19 = vld [vmem:[%s622_s4] ss:$0 sm:$0xff]  ;;  %s537_s4 = smov [#allocation9]  }
 0x109   :  { %v163_v21 = vpop.f32.mrf.mxu0  ;;  %s357_s23 = sshll.u32 %s537_s4, 4  ;;  %s358_s23 = int_to_ptr.vmem [resolvable:$true] %s357_s23 }
 0x10a   :  { %v175_v22 = vmul.f32 0.70710677, %v169_v20  ;;  %v164_v23 = vadd.f32 %v370_v18, %v163_v21  ;;  %v173_v31 = vmul.f32 0.5, %v169_v20  ;;  %s503_s24 = scalar_lea.vmem %s358_s23, 512  ;;  %p508_p2 = scmp.lt.s32.totalorder %s358_s23, %s358_s23 }
 0x10b   :  { %p504_p1 = scmp.ne.s32.totalorder %s358_s23, %s503_s24  ;;  %p509_p3 = scmp.lt.s32.totalorder %s503_s24, %s503_s24 }
 0x10c   :  { %v174_v24 = vmul.f32 0.70710677, %v164_v23  ;;  %435 = verf.f32 %v175_v22  ;;  %v172_v27 = vmul.f32 0.5, %v164_v23 }
 0x10d   :  { %p510_p4 = por %p509_p3, %p508_p2 }
 0x10e   :  { %437 = verf.f32 %v174_v24 }
 0x10f   :  { %p511_p5 = pnand %p510_p4, %p504_p1 }
 0x119   :  { %v436_v25 = vpop.eup %435 }
 0x11a   :  { %v179_v30 = vadd.f32 1.0, %v436_v25 }
 0x11b   :  { %v438_v26 = vpop.eup %437 }
 0x11c   :  { %v178_v28 = vadd.f32 1.0, %v438_v26  ;;  %v181_v32 = vmul.f32 %v179_v30, %v173_v31  ;;  %v261_v26 = vlaneseq }
 0x11e   :  { %v180_v29 = vmul.f32 %v178_v28, %v172_v27  ;;  %v262_v27 = vshrl.u32 %v261_v26, 7 }
 0x120   :  { %182 = vadd.xlane.f32.xlu0 %v180_v29  ;;  %v263_v28 = vsub.s32 0, %v262_v27  ;;  %v267_v30 = vsub.s32 1, %v262_v27 }
 0x124   :  { %184 = vadd.xlane.f32.xlu0 %v181_v32 }
 0x1a9   :  { %v183_v41 = vpop.xlane.xlu0 %182 }
 0x1aa   :  { %v187_v42 = vmul.f32 0.0078125, %v183_v41 }
 0x1ac   :  { %v593_v43 = vsub.f32 %v180_v29, %v187_v42  ;;  %v259_v29 = vld [vmem:[%s624_s6] sm:$0x3] }
 0x1ad   :  { %v185_v44 = vpop.xlane.xlu0 %184  ;;  %v264_v31 = vrot.slane %v259_v29, %v263_v28 }
 0x1ae   :  { %v188_v45 = vmul.f32 0.0078125, %v185_v44  ;;  %v191_v46 = vmul.f32 %v593_v43, %v593_v43 }
 0x1b0   :  { %v597_v47 = vsub.f32 %v181_v32, %v188_v45  ;;  %193 = vadd.xlane.f32.xlu1 %v191_v46  ;;  %v268_v32 = vrot.slane %v259_v29, %v267_v30 }
 0x1b2   :  { %v192_v48 = vmul.f32 %v597_v47, %v597_v47 }
 0x1b4   :  { %195 = vadd.xlane.f32.xlu1 %v192_v48 }
 0x239   :  { %v194_v10 = vpop.xlane.xlu1 %193 }
 0x23a   :  { %v197_v11 = vmul.f32 0.0078125, %v194_v10 }
 0x23c   :  { %v199_v12 = vadd.f32 1e-12, %v197_v11 }
 0x23d   :  { %v196_v13 = vpop.xlane.xlu1 %195 }
 0x23e   :  { %439 = vrsqrt.f32 %v199_v12  ;;  %v198_v14 = vmul.f32 0.0078125, %v196_v13 }
 0x240   :  { %v200_v15 = vadd.f32 1e-12, %v198_v14 }
 0x242   :  { %441 = vrsqrt.f32 %v200_v15 }
 0x24b   :  { %v440_v16 = vpop.eup %439 }
 0x24c   :  { %v203_v18 = vmul.f32 %v440_v16, %v593_v43 }
 0x24e   :  { %v212_v20 = vmul.f32 %v371_v17, %v203_v18 }
 0x24f   :  { %v442_v21 = vpop.eup %441 }
 0x250   :  { %v221_v22 = vadd.f32 %v372_v19, %v212_v20  ;;  %v204_v23 = vmul.f32 %v442_v21, %v597_v47 }
 0x252   :  { %336 = vmatmul.mubr.f32.vlgmr.msra.gmra.mxu1 %v221_v22  ;;  %v213_v24 = vmul.f32 %v371_v17, %v204_v23 }
 0x253   :  { %341 = vmatprep.mubr.f32.mxu1 %v536_v62 }
 0x254   :  { %v222_v25 = vadd.f32 %v372_v19, %v213_v24 }
 0x256   :  { %342 = vmatmul.mubr.f32.gmra.mxu1 %v222_v25 }
 0x312   :  { %v337_v33 = vpop.f32.mrf.mxu1 }
 0x313   :  { %v338_v34 = vadd.f32 %v337_v33, %v264_v31 }
 0x314   :  { %v339_v35 = vpop.f32.mrf.mxu1 }
 0x315   :  { %348 = vst [vmem:[#allocation9] sm:$0xff] %v338_v34  ;;  %v340_v36 = vadd.f32 %v339_v35, %v268_v32 }
 0x316   :  { %v343_v37 = vpop.f32.mrf.mxu1 }
 0x317   :  { %349 = vst [vmem:[#allocation9 + $0x8] sm:$0xff] %v340_v36  ;;  %v344_v38 = vadd.f32 %v343_v37, %v264_v31 }
 0x318   :  { %v345_v39 = vpop.f32.mrf.mxu1 }
 0x319   :  { %350 = vst [vmem:[#allocation9 + $0x10] sm:$0xff] %v344_v38  ;;  %v346_v40 = vadd.f32 %v345_v39, %v268_v32 }
 0x31b   :  { %351 = vst [vmem:[#allocation9 + $0x18] sm:$0xff] %v346_v40 }
 0x31c   :  { %514 = shalt.err (!%p511_p5)
}
 0x31d   :  { %363 = dma.vmem_to_hbm [thread:$0]  %s358_s23, 512, %s625_s7, [#allocation5], %s534_s1, %s534_s1, %s535_s16  }
 0x31e   :  { %527 = dma.done.wait [#allocation5], 512  }
 0x31f   :  { %528 = vsyncadd [#allocation5], 4294966784 }
 0x320   :  { %367 = vsyncpa [#allocation4], 1 }
 0x321   :  { %368 = vsyncpa [#allocation7], 1 }
 0x322   :  { %369 = vsyncpa [#allocation5], 1 }

</bundles_post_ra>
